<compile_context>
chip_gen: v7x
topology: tpu7x:2x2x1
jax: 0.10.0
libtpu: 0.0.40
codegen_flags: <defaults>
</compile_context>

<pallas_src>
import functools

import jax
import jax.numpy as jnp
from jax import lax
from jax.experimental import pallas as pl
from jax.experimental.pallas import tpu as pltpu


def _round_up(x, m):
    return (x + m - 1) // m * m


def _basic_block_kernel(x_ref, w1_ref, w2_ref, s1_ref, b1_ref, s2_ref, b2_ref,
                        cmask_ref, o_ref, xs_ref, p1_ref, p2_ref, *,
                        TH, H, W, Cp_in, Cp_mid, Cout, n_strips, L1p, WX):
    # x_ref:  (1, Cp_in, H*W)   full image, flat NCHW, channel-padded to 8
    # w*_ref: im2col weights (out_rows, 9*Cp_k), padding rows/cols are zero
    # s*/b*:  folded BatchNorm scale / bias (per output channel, padded)
    # cmask:  (2, WX) f32: row0 kills column-0 lanes, row1 kills column-(W-1)
    # o_ref:  (1, Cout, TH*W)   one row-strip of the output (flat NCHW)
    # xs_ref: (Cp_in, WX)       strip of x + 2-row halo (data in [0,(TH+4)*W))
    # p1/p2:  im2col patch matrices for conv1 / conv2
    s = pl.program_id(1)
    L1 = (TH + 2) * W            # conv1 rows computed (+-1-row halo for conv2)
    L2 = TH * W                  # output rows of this strip

    # ---- stage 0: strip of x (+2 halo rows) into VMEM ----------------------
    # Only boundary strips zero their out-of-image halo rows; interior strips
    # are a pure copy.  The tail [ (TH+4)*W, WX ) is never written: anything
    # it holds only ever reaches masked tap lanes or pad-K patch columns.
    if n_strips == 1:
        xs_ref[:, 0:2 * W] = jnp.zeros((Cp_in, 2 * W), jnp.float32)
        xs_ref[:, 2 * W:(H + 2) * W] = x_ref[0]
        xs_ref[:, (H + 2) * W:(H + 4) * W] = jnp.zeros((Cp_in, 2 * W),
                                                       jnp.float32)
    else:
        @pl.when(s == 0)
        def _():
            xs_ref[:, 0:2 * W] = jnp.zeros((Cp_in, 2 * W), jnp.float32)
            xs_ref[:, 2 * W:(TH + 4) * W] = x_ref[0, :, 0:(TH + 2) * W]

        @pl.when(s == n_strips - 1)
        def _():
            xs_ref[:, 0:(TH + 2) * W] = x_ref[0, :, (H - TH - 2) * W:H * W]
            xs_ref[:, (TH + 2) * W:(TH + 4) * W] = jnp.zeros((Cp_in, 2 * W),
                                                             jnp.float32)

        if n_strips > 2:
            @pl.when(jnp.logical_and(s > 0, s < n_strips - 1))
            def _():
                start = pl.multiple_of((s * TH - 2) * W, W)
                xs_ref[:, 0:(TH + 4) * W] = (
                    x_ref[0, :, pl.ds(start, (TH + 4) * W)])

    lm = cmask_ref[0:1, :] > 0.5          # keep unless column == 0
    rm = cmask_ref[1:2, :] > 0.5          # keep unless column == W-1

    # ---- stage 1: conv1 + bn1 + relu as ONE im2col matmul ------------------
    # 1 aligned plane load + 2 XLU rolls + 2 selects replace 9 misaligned
    # masked loads; each tap store is a full sublane-tile aligned store.
    xc = xs_ref[...]                                           # (Cp_in, WX)
    xl = jnp.where(lm, pltpu.roll(xc, 1, axis=1), 0.0)         # x[., c-1]
    xr = jnp.where(rm, pltpu.roll(xc, WX - 1, axis=1), 0.0)    # x[., c+1]
    for dy in range(3):
        t = 3 * dy
        p1_ref[(t + 0) * Cp_in:(t + 1) * Cp_in, :] = (
            xl[:, dy * W:dy * W + L1p].astype(p1_ref.dtype))
        p1_ref[(t + 1) * Cp_in:(t + 2) * Cp_in, :] = (
            xc[:, dy * W:dy * W + L1p].astype(p1_ref.dtype))
        p1_ref[(t + 2) * Cp_in:(t + 3) * Cp_in, :] = (
            xr[:, dy * W:dy * W + L1p].astype(p1_ref.dtype))
    mid = jnp.dot(w1_ref[...], p1_ref[...],
                  preferred_element_type=jnp.float32)          # (Cp_mid, L1p)
    mid = jnp.maximum(mid * s1_ref[...] + b1_ref[...], 0.0)

    # ---- stage 2: conv2 im2col (mid stays a value; no ms scratch) ----------
    ml = jnp.where(lm[:, :L1p], pltpu.roll(mid, 1, axis=1), 0.0)
    mr = jnp.where(rm[:, :L1p], pltpu.roll(mid, L1p - 1, axis=1), 0.0)
    for dy in range(3):
        t = 3 * dy
        p2_ref[(t + 0) * Cp_mid:(t + 1) * Cp_mid, :] = (
            ml[:, dy * W:dy * W + L2].astype(p2_ref.dtype))
        p2_ref[(t + 1) * Cp_mid:(t + 2) * Cp_mid, :] = (
            mid[:, dy * W:dy * W + L2].astype(p2_ref.dtype))
        p2_ref[(t + 2) * Cp_mid:(t + 3) * Cp_mid, :] = (
            mr[:, dy * W:dy * W + L2].astype(p2_ref.dtype))

    # conv2's zero padding rows (image rows -1 / H) only enter through the
    # dy=0 taps of output row 0 and the dy=2 taps of output row TH-1: zero
    # those small patch regions on boundary strips only.
    @pl.when(s == 0)
    def _():
        p2_ref[0:3 * Cp_mid, 0:W] = jnp.zeros((3 * Cp_mid, W), p2_ref.dtype)

    @pl.when(s == n_strips - 1)
    def _():
        p2_ref[6 * Cp_mid:9 * Cp_mid, L2 - W:L2] = (
            jnp.zeros((3 * Cp_mid, W), p2_ref.dtype))

    # ---- stage 3: conv2 + bn2 + residual + relu -----------------------------
    y = jnp.dot(w2_ref[...], p2_ref[...],
                preferred_element_type=jnp.float32)            # (Cout, L2)
    y = y * s2_ref[...] + b2_ref[...]
    if n_strips == 1:
        res = x_ref[0]                                         # (Cp_in, L2)
    else:
        rstart = pl.multiple_of(s * L2, 128)                   # L2 % 128 == 0
        res = x_ref[0, :, pl.ds(rstart, L2)]
    y = y + res[0:Cout, :]
    o_ref[...] = jnp.maximum(y, 0.0).reshape(1, Cout, L2).astype(o_ref.dtype)


def _fold_bn(gamma, beta, mean, var, eps=1e-5):
    scale = gamma / jnp.sqrt(var + eps)
    return scale, beta - mean * scale


def _pick_strip_rows(H, W, Cp_in, Cp_mid, N, itemsize, budget=40 << 20):
    """Output rows per grid step.

    batch >= 2 already feeds both v7x TensorCores via the batch grid axis, so
    prefer one big lane-dense strip per image (also right for single-core
    v5e/v6e).  Only batch 1 splits H into >= 2 strips.  Strips smaller than H
    must divide H and keep TH*W a multiple of 128 (lane-aligned output blocks
    and residual reads)."""
    def cost(th):
        l1p = _round_up((th + 2) * W, 128)
        wx = _round_up(2 * W + l1p, 128)
        return (2 * Cp_in * H * W * 4 + Cp_in * wx * 4
                + 9 * Cp_in * l1p * itemsize + 9 * Cp_mid * th * W * itemsize)

    cands = [th for th in range(H - 1, 0, -1)
             if H % th == 0 and (th * W) % 128 == 0 and th + 2 <= H]
    if N >= 2 or not cands:
        cands = [H] + cands
    for th in cands:
        if cost(th) <= budget:
            return th
    return cands[-1]


def basic_block_forward(x_nchw, params, *, compute_dtype=jnp.float32):
    """BasicBlock forward (stride=1, downsample=None). Input/output NCHW."""
    N, Cin, H, W = x_nchw.shape
    w1, w2 = params["w1"], params["w2"]           # (3, 3, Cin, C) HWIO layout
    Cmid, Cout = w1.shape[-1], w2.shape[-1]
    assert w1.shape == (3, 3, Cin, Cmid) and w2.shape == (3, 3, Cmid, Cout)
    assert Cout == Cin, "stride=1 / downsample=None requires Cout == Cin"

    dsz = jnp.dtype(compute_dtype).itemsize
    sub = 8 if dsz >= 4 else 16                   # sublane tile rows
    Cp_in = _round_up(Cin, sub)
    Cp_mid = _round_up(Cmid, sub)

    s1, b1 = _fold_bn(params["bn1_gamma"], params["bn1_beta"],
                      params["bn1_mean"], params["bn1_var"])
    s2, b2 = _fold_bn(params["bn2_gamma"], params["bn2_beta"],
                      params["bn2_mean"], params["bn2_var"])

    TH = _pick_strip_rows(H, W, Cp_in, Cp_mid, N, dsz)
    n_strips = H // TH
    L1 = (TH + 2) * W
    L1p = _round_up(L1, 128)                      # roll/patch width (lane tile)
    L2 = TH * W
    WX = _round_up(2 * W + L1p, 128)              # x-plane width (lane tile)

    # Channel-pad x to the sublane tile (zero rows) so every im2col tap write
    # is a full, unmasked tile store.  Free for real ResNet widths (C % 8 == 0).
    x_flat = x_nchw.reshape(N, Cin, H * W).astype(jnp.float32)
    if Cp_in > Cin:
        x_flat = jnp.pad(x_flat, ((0, 0), (0, Cp_in - Cin), (0, 0)))

    # im2col weights: (out, 9*Cp), column index = (dy*3+dx)*Cp + ci, channel
    # padding rows/columns are zero.
    w1_p = jnp.zeros((3, 3, Cp_in, Cp_mid), compute_dtype)
    w1_p = w1_p.at[:, :, :Cin, :Cmid].set(w1.astype(compute_dtype))
    w2_p = jnp.zeros((3, 3, Cp_mid, Cout), compute_dtype)
    w2_p = w2_p.at[:, :, :Cmid, :].set(w2.astype(compute_dtype))
    w1_mat = jnp.transpose(w1_p.reshape(9 * Cp_in, Cp_mid))
    w2_mat = jnp.transpose(w2_p.reshape(9 * Cp_mid, Cout))

    s1c = jnp.zeros((Cp_mid, 1), jnp.float32).at[:Cmid, 0].set(s1)
    b1c = jnp.zeros((Cp_mid, 1), jnp.float32).at[:Cmid, 0].set(b1)
    s2c = s2.reshape(Cout, 1).astype(jnp.float32)
    b2c = b2.reshape(Cout, 1).astype(jnp.float32)

    col = jnp.arange(WX, dtype=jnp.int32) % W
    cmask = jnp.stack([(col != 0), (col != W - 1)]).astype(jnp.float32)

    # Explicit VMEM budget: double-buffered blocks + persistent scratch, 2x
    # margin, clamped under v7x's 64 MiB physical VMEM.
    f32 = 4
    block_bytes = (2 * Cp_in * H * W * f32
                   + 2 * (Cp_mid * 9 * Cp_in + Cout * 9 * Cp_mid) * dsz
                   + 4 * (Cp_mid + Cout) * f32
                   + 2 * 2 * WX * f32
                   + 2 * Cout * L2 * f32)
    scratch_bytes = (Cp_in * WX * f32
                     + 9 * Cp_in * L1p * dsz + 9 * Cp_mid * L2 * dsz)
    vmem_limit = int(min(max(2 * (block_bytes + scratch_bytes), 16 << 20),
                         48 << 20))

    kernel = functools.partial(
        _basic_block_kernel, TH=TH, H=H, W=W,
        Cp_in=Cp_in, Cp_mid=Cp_mid, Cout=Cout,
        n_strips=n_strips, L1p=L1p, WX=WX)

    out = pl.pallas_call(
        kernel,
        out_shape=jax.ShapeDtypeStruct((N, Cout, H * W), jnp.float32),
        grid_spec=pltpu.PrefetchScalarGridSpec(
            num_scalar_prefetch=0,
            grid=(N, n_strips),
            in_specs=[
                pl.BlockSpec((1, Cp_in, H * W), lambda n, s: (n, 0, 0)),
                pl.BlockSpec((Cp_mid, 9 * Cp_in), lambda n, s: (0, 0)),
                pl.BlockSpec((Cout, 9 * Cp_mid), lambda n, s: (0, 0)),
                pl.BlockSpec((Cp_mid, 1), lambda n, s: (0, 0)),
                pl.BlockSpec((Cp_mid, 1), lambda n, s: (0, 0)),
                pl.BlockSpec((Cout, 1), lambda n, s: (0, 0)),
                pl.BlockSpec((Cout, 1), lambda n, s: (0, 0)),
                pl.BlockSpec((2, WX), lambda n, s: (0, 0)),
            ],
            out_specs=pl.BlockSpec((1, Cout, L2), lambda n, s: (n, 0, s)),
            scratch_shapes=[
                pltpu.VMEM((Cp_in, WX), jnp.float32),        # x strip + halo
                pltpu.VMEM((9 * Cp_in, L1p), compute_dtype),  # im2col conv1
                pltpu.VMEM((9 * Cp_mid, L2), compute_dtype),  # im2col conv2
            ],
        ),
        compiler_params=pltpu.CompilerParams(
            dimension_semantics=("parallel", "parallel"),
            vmem_limit_bytes=vmem_limit),
    )(x_flat, w1_mat, w2_mat, s1c, b1c, s2c, b2c, cmask)

    return out.reshape(N, Cout, H, W)            # free reshape, already NCHW


def _reference_forward(x_nchw, params):
    """Plain-JAX reference (lax.conv) used only for the correctness check."""
    x = jnp.transpose(x_nchw, (0, 2, 3, 1))

    def conv(inp, w):
        return lax.conv_general_dilated(
            inp, w, window_strides=(1, 1), padding=((1, 1), (1, 1)),
            dimension_numbers=("NHWC", "HWIO", "NHWC"))

    s1, b1 = _fold_bn(params["bn1_gamma"], params["bn1_beta"],
                      params["bn1_mean"], params["bn1_var"])
    s2, b2 = _fold_bn(params["bn2_gamma"], params["bn2_beta"],
                      params["bn2_mean"], params["bn2_var"])
    out = jnp.maximum(conv(x, params["w1"]) * s1 + b1, 0.0)
    out = jnp.maximum(conv(out, params["w2"]) * s2 + b2 + x, 0.0)
    return jnp.transpose(out, (0, 3, 1, 2))


def init_params(key, inplanes, planes):
    k1, k2, k3, k4 = jax.random.split(key, 4)
    # conv weights stored as [KH, KW, Cin, Cout] (HWIO)
    w1 = 0.1 * jax.random.normal(k1, (3, 3, inplanes, planes), jnp.float32)
    w2 = 0.1 * jax.random.normal(k2, (3, 3, planes, planes), jnp.float32)
    return dict(
        w1=w1, w2=w2,
        bn1_gamma=1.0 + 0.05 * jax.random.normal(k3, (planes,), jnp.float32),
        bn1_beta=0.05 * jax.random.normal(k4, (planes,), jnp.float32),
        bn1_mean=jnp.zeros((planes,), jnp.float32),
        bn1_var=jnp.ones((planes,), jnp.float32),
        bn2_gamma=jnp.ones((planes,), jnp.float32),
        bn2_beta=jnp.zeros((planes,), jnp.float32),
        bn2_mean=jnp.zeros((planes,), jnp.float32),
        bn2_var=jnp.ones((planes,), jnp.float32),
    )


if __name__ == "__main__":
    key = jax.random.PRNGKey(0)
    kx, kp = jax.random.split(key)
    N, C, H, W = 2, 4, 16, 16          # inplanes = planes = 4, stride = 1
    x = jax.random.normal(kx, (N, C, H, W), jnp.float32)
    params = init_params(kp, C, C)

    # batch 2 -> single strip per image (batch axis feeds both v7x cores)
    out = jax.block_until_ready(basic_block_forward(x, params))
    ref = _reference_forward(x, params)
    assert out.shape == (N, C, H, W)
    assert jnp.allclose(out, ref, atol=1e-4, rtol=1e-4), (
        float(jnp.max(jnp.abs(out - ref))))

    # batch 1 -> H is split into 2 row strips: exercises the boundary-strip
    # branches and the dynamic lane-aligned residual read.
    x1 = jax.random.normal(kx, (1, C, H, W), jnp.float32)
    out1 = jax.block_until_ready(basic_block_forward(x1, params))
    ref1 = _reference_forward(x1, params)
    assert jnp.allclose(out1, ref1, atol=1e-4, rtol=1e-4), (
        float(jnp.max(jnp.abs(out1 - ref1))))

    print("KERNEL_OK")
</pallas_src>

<mosaic_0001>
module attributes {stable_mosaic.version = 11 : i64} {
  func.func @_basic_block_kernel(%arg0: i32, %arg1: i32, %arg2: memref<1x8x256xf32, #tpu.memory_space<vmem>>, %arg3: memref<8x72xf32, #tpu.memory_space<vmem>>, %arg4: memref<4x72xf32, #tpu.memory_space<vmem>>, %arg5: memref<8x1xf32, #tpu.memory_space<vmem>>, %arg6: memref<8x1xf32, #tpu.memory_space<vmem>>, %arg7: memref<4x1xf32, #tpu.memory_space<vmem>>, %arg8: memref<4x1xf32, #tpu.memory_space<vmem>>, %arg9: memref<2x512xf32, #tpu.memory_space<vmem>>, %arg10: memref<1x4x256xf32, #tpu.memory_space<vmem>>, %arg11: memref<8x512xf32, #tpu.memory_space<vmem>>, %arg12: memref<72x384xf32, #tpu.memory_space<vmem>>, %arg13: memref<72x256xf32, #tpu.memory_space<vmem>>) attributes {dimension_semantics = [#tpu.dimension_semantics<parallel>, #tpu.dimension_semantics<parallel>], iteration_bounds = array<i64: 2, 1>, scalar_prefetch = 0 : i64, scratch_operands = 3 : i64, tpu.core_type = #tpu.core_type<tc>, window_params = [{transform_indices = @transform_0, window_bounds = array<i64: 1, 8, 256>}, {pipeline_mode = #tpu.pipeline_mode<synchronous>, transform_indices = @transform_1, window_bounds = array<i64: 8, 72>}, {pipeline_mode = #tpu.pipeline_mode<synchronous>, transform_indices = @transform_2, window_bounds = array<i64: 4, 72>}, {pipeline_mode = #tpu.pipeline_mode<synchronous>, transform_indices = @transform_3, window_bounds = array<i64: 8, 1>}, {pipeline_mode = #tpu.pipeline_mode<synchronous>, transform_indices = @transform_4, window_bounds = array<i64: 8, 1>}, {pipeline_mode = #tpu.pipeline_mode<synchronous>, transform_indices = @transform_5, window_bounds = array<i64: 4, 1>}, {pipeline_mode = #tpu.pipeline_mode<synchronous>, transform_indices = @transform_6, window_bounds = array<i64: 4, 1>}, {pipeline_mode = #tpu.pipeline_mode<synchronous>, transform_indices = @transform_7, window_bounds = array<i64: 2, 512>}, {transform_indices = @transform_8, window_bounds = array<i64: 1, 4, 256>}]} {
    %cst = arith.constant 0.000000e+00 : f32
    %0 = vector.broadcast %cst : f32 to vector<8x32xf32>
    %c0 = arith.constant 0 : index
    %c0_0 = arith.constant 0 : index
    %1 = vector.load %arg11[%c0, %c0_0] : memref<8x512xf32, #tpu.memory_space<vmem>>, vector<8x32xf32>
    tpu.vector_store %arg11[%c0, %c0_0], %0 {strides = array<i32>} : memref<8x512xf32, #tpu.memory_space<vmem>>, vector<8x32xf32>,
    %c0_1 = arith.constant 0 : index
    %c0_2 = arith.constant 0 : index
    %c0_3 = arith.constant 0 : index
    %2 = vector.load %arg2[%c0_1, %c0_2, %c0_3] : memref<1x8x256xf32, #tpu.memory_space<vmem>>, vector<1x8x256xf32>
    %3 = vector.shape_cast %2 : vector<1x8x256xf32> to vector<8x256xf32>
    %c0_4 = arith.constant 0 : index
    %c32 = arith.constant 32 : index
    %4 = vector.load %arg11[%c0_4, %c32] : memref<8x512xf32, #tpu.memory_space<vmem>>, vector<8x256xf32>
    tpu.vector_store %arg11[%c0_4, %c32], %3 {strides = array<i32>} : memref<8x512xf32, #tpu.memory_space<vmem>>, vector<8x256xf32>,
    %cst_5 = arith.constant 0.000000e+00 : f32
    %5 = vector.broadcast %cst_5 : f32 to vector<8x32xf32>
    %c0_6 = arith.constant 0 : index
    %c288 = arith.constant 288 : index
    %6 = vector.load %arg11[%c0_6, %c288] : memref<8x512xf32, #tpu.memory_space<vmem>>, vector<8x32xf32>
    tpu.vector_store %arg11[%c0_6, %c288], %5 {strides = array<i32>} : memref<8x512xf32, #tpu.memory_space<vmem>>, vector<8x32xf32>,
    %c0_7 = arith.constant 0 : index
    %c0_8 = arith.constant 0 : index
    %7 = vector.load %arg9[%c0_7, %c0_8] : memref<2x512xf32, #tpu.memory_space<vmem>>, vector<1x512xf32>
    %cst_9 = arith.constant 5.000000e-01 : f32
    %8 = vector.broadcast %cst_9 : f32 to vector<1x512xf32>
    %9 = arith.cmpf ogt, %7, %8 : vector<1x512xf32>
    %c1 = arith.constant 1 : index
    %c0_10 = arith.constant 0 : index
    %10 = vector.load %arg9[%c1, %c0_10] : memref<2x512xf32, #tpu.memory_space<vmem>>, vector<1x512xf32>
    %cst_11 = arith.constant 5.000000e-01 : f32
    %11 = vector.broadcast %cst_11 : f32 to vector<1x512xf32>
    %12 = arith.cmpf ogt, %10, %11 : vector<1x512xf32>
    %c0_12 = arith.constant 0 : index
    %c0_13 = arith.constant 0 : index
    %13 = vector.load %arg11[%c0_12, %c0_13] : memref<8x512xf32, #tpu.memory_space<vmem>>, vector<8x512xf32>
    %c1_i32 = arith.constant 1 : i32
    %14 = tpu.dynamic_rotate %13 by %c1_i32 dim 1 : vector<8x512xf32>, i32 -> vector<8x512xf32>
    %cst_14 = arith.constant 0.000000e+00 : f32
    %15 = vector.shape_cast %9 : vector<1x512xi1> to vector<1x512xi1>
    %16 = vector.broadcast %15 : vector<1x512xi1> to vector<8x512xi1>
    %17 = vector.broadcast %cst_14 : f32 to vector<8x512xf32>
    %18 = arith.select %16, %14, %17 : vector<8x512xi1>, vector<8x512xf32>
    %c511_i32 = arith.constant 511 : i32
    %19 = tpu.dynamic_rotate %13 by %c511_i32 dim 1 : vector<8x512xf32>, i32 -> vector<8x512xf32>
    %cst_15 = arith.constant 0.000000e+00 : f32
    %20 = vector.shape_cast %12 : vector<1x512xi1> to vector<1x512xi1>
    %21 = vector.broadcast %20 : vector<1x512xi1> to vector<8x512xi1>
    %22 = vector.broadcast %cst_15 : f32 to vector<8x512xf32>
    %23 = arith.select %21, %19, %22 : vector<8x512xi1>, vector<8x512xf32>
    %24 = vector.extract_strided_slice %18 {offsets = [0, 0], sizes = [8, 384], strides = [1, 1]} : vector<8x512xf32> to vector<8x384xf32>
    %c0_16 = arith.constant 0 : index
    %c0_17 = arith.constant 0 : index
    %25 = vector.load %arg12[%c0_16, %c0_17] : memref<72x384xf32, #tpu.memory_space<vmem>>, vector<8x384xf32>
    tpu.vector_store %arg12[%c0_16, %c0_17], %24 {strides = array<i32>} : memref<72x384xf32, #tpu.memory_space<vmem>>, vector<8x384xf32>,
    %26 = vector.extract_strided_slice %13 {offsets = [0, 0], sizes = [8, 384], strides = [1, 1]} : vector<8x512xf32> to vector<8x384xf32>
    %c8 = arith.constant 8 : index
    %c0_18 = arith.constant 0 : index
    %27 = vector.load %arg12[%c8, %c0_18] : memref<72x384xf32, #tpu.memory_space<vmem>>, vector<8x384xf32>
    tpu.vector_store %arg12[%c8, %c0_18], %26 {strides = array<i32>} : memref<72x384xf32, #tpu.memory_space<vmem>>, vector<8x384xf32>,
    %28 = vector.extract_strided_slice %23 {offsets = [0, 0], sizes = [8, 384], strides = [1, 1]} : vector<8x512xf32> to vector<8x384xf32>
    %c16 = arith.constant 16 : index
    %c0_19 = arith.constant 0 : index
    %29 = vector.load %arg12[%c16, %c0_19] : memref<72x384xf32, #tpu.memory_space<vmem>>, vector<8x384xf32>
    tpu.vector_store %arg12[%c16, %c0_19], %28 {strides = array<i32>} : memref<72x384xf32, #tpu.memory_space<vmem>>, vector<8x384xf32>,
    %30 = vector.extract_strided_slice %18 {offsets = [0, 16], sizes = [8, 384], strides = [1, 1]} : vector<8x512xf32> to vector<8x384xf32>
    %c24 = arith.constant 24 : index
    %c0_20 = arith.constant 0 : index
    %31 = vector.load %arg12[%c24, %c0_20] : memref<72x384xf32, #tpu.memory_space<vmem>>, vector<8x384xf32>
    tpu.vector_store %arg12[%c24, %c0_20], %30 {strides = array<i32>} : memref<72x384xf32, #tpu.memory_space<vmem>>, vector<8x384xf32>,
    %32 = vector.extract_strided_slice %13 {offsets = [0, 16], sizes = [8, 384], strides = [1, 1]} : vector<8x512xf32> to vector<8x384xf32>
    %c32_21 = arith.constant 32 : index
    %c0_22 = arith.constant 0 : index
    %33 = vector.load %arg12[%c32_21, %c0_22] : memref<72x384xf32, #tpu.memory_space<vmem>>, vector<8x384xf32>
    tpu.vector_store %arg12[%c32_21, %c0_22], %32 {strides = array<i32>} : memref<72x384xf32, #tpu.memory_space<vmem>>, vector<8x384xf32>,
    %34 = vector.extract_strided_slice %23 {offsets = [0, 16], sizes = [8, 384], strides = [1, 1]} : vector<8x512xf32> to vector<8x384xf32>
    %c40 = arith.constant 40 : index
    %c0_23 = arith.constant 0 : index
    %35 = vector.load %arg12[%c40, %c0_23] : memref<72x384xf32, #tpu.memory_space<vmem>>, vector<8x384xf32>
    tpu.vector_store %arg12[%c40, %c0_23], %34 {strides = array<i32>} : memref<72x384xf32, #tpu.memory_space<vmem>>, vector<8x384xf32>,
    %36 = vector.extract_strided_slice %18 {offsets = [0, 32], sizes = [8, 384], strides = [1, 1]} : vector<8x512xf32> to vector<8x384xf32>
    %c48 = arith.constant 48 : index
    %c0_24 = arith.constant 0 : index
    %37 = vector.load %arg12[%c48, %c0_24] : memref<72x384xf32, #tpu.memory_space<vmem>>, vector<8x384xf32>
    tpu.vector_store %arg12[%c48, %c0_24], %36 {strides = array<i32>} : memref<72x384xf32, #tpu.memory_space<vmem>>, vector<8x384xf32>,
    %38 = vector.extract_strided_slice %13 {offsets = [0, 32], sizes = [8, 384], strides = [1, 1]} : vector<8x512xf32> to vector<8x384xf32>
    %c56 = arith.constant 56 : index
    %c0_25 = arith.constant 0 : index
    %39 = vector.load %arg12[%c56, %c0_25] : memref<72x384xf32, #tpu.memory_space<vmem>>, vector<8x384xf32>
    tpu.vector_store %arg12[%c56, %c0_25], %38 {strides = array<i32>} : memref<72x384xf32, #tpu.memory_space<vmem>>, vector<8x384xf32>,
    %40 = vector.extract_strided_slice %23 {offsets = [0, 32], sizes = [8, 384], strides = [1, 1]} : vector<8x512xf32> to vector<8x384xf32>
    %c64 = arith.constant 64 : index
    %c0_26 = arith.constant 0 : index
    %41 = vector.load %arg12[%c64, %c0_26] : memref<72x384xf32, #tpu.memory_space<vmem>>, vector<8x384xf32>
    tpu.vector_store %arg12[%c64, %c0_26], %40 {strides = array<i32>} : memref<72x384xf32, #tpu.memory_space<vmem>>, vector<8x384xf32>,
    %c0_27 = arith.constant 0 : index
    %c0_28 = arith.constant 0 : index
    %42 = vector.load %arg3[%c0_27, %c0_28] : memref<8x72xf32, #tpu.memory_space<vmem>>, vector<8x72xf32>
    %c0_29 = arith.constant 0 : index
    %c0_30 = arith.constant 0 : index
    %43 = vector.load %arg12[%c0_29, %c0_30] : memref<72x384xf32, #tpu.memory_space<vmem>>, vector<72x384xf32>
    %cst_31 = arith.constant dense<0.000000e+00> : vector<8x384xf32>
    %44 = tpu.matmul %42, %43, %cst_31 {dimension_numbers = #tpu.dot_dimension_numbers<[1], [0], [0], [1], [0, 0, 1, 1], [], []>} : vector<8x72xf32>, vector<72x384xf32>, vector<8x384xf32> -> vector<8x384xf32>
    %c0_32 = arith.constant 0 : index
    %c0_33 = arith.constant 0 : index
    %45 = vector.load %arg5[%c0_32, %c0_33] : memref<8x1xf32, #tpu.memory_space<vmem>>, vector<8x1xf32>
    %46 = vector.broadcast %45 : vector<8x1xf32> to vector<8x384xf32>
    %47 = arith.mulf %44, %46 : vector<8x384xf32>
    %c0_34 = arith.constant 0 : index
    %c0_35 = arith.constant 0 : index
    %48 = vector.load %arg6[%c0_34, %c0_35] : memref<8x1xf32, #tpu.memory_space<vmem>>, vector<8x1xf32>
    %49 = vector.broadcast %48 : vector<8x1xf32> to vector<8x384xf32>
    %50 = arith.addf %47, %49 : vector<8x384xf32>
    %cst_36 = arith.constant 0.000000e+00 : f32
    %51 = vector.broadcast %cst_36 : f32 to vector<8x384xf32>
    %52 = arith.maximumf %50, %51 : vector<8x384xf32>
    %53 = vector.extract_strided_slice %9 {offsets = [0, 0], sizes = [1, 384], strides = [1, 1]} : vector<1x512xi1> to vector<1x384xi1>
    %c1_i32_37 = arith.constant 1 : i32
    %54 = tpu.dynamic_rotate %52 by %c1_i32_37 dim 1 : vector<8x384xf32>, i32 -> vector<8x384xf32>
    %cst_38 = arith.constant 0.000000e+00 : f32
    %55 = vector.shape_cast %53 : vector<1x384xi1> to vector<1x384xi1>
    %56 = vector.broadcast %55 : vector<1x384xi1> to vector<8x384xi1>
    %57 = vector.broadcast %cst_38 : f32 to vector<8x384xf32>
    %58 = arith.select %56, %54, %57 : vector<8x384xi1>, vector<8x384xf32>
    %59 = vector.extract_strided_slice %12 {offsets = [0, 0], sizes = [1, 384], strides = [1, 1]} : vector<1x512xi1> to vector<1x384xi1>
    %c383_i32 = arith.constant 383 : i32
    %60 = tpu.dynamic_rotate %52 by %c383_i32 dim 1 : vector<8x384xf32>, i32 -> vector<8x384xf32>
    %cst_39 = arith.constant 0.000000e+00 : f32
    %61 = vector.shape_cast %59 : vector<1x384xi1> to vector<1x384xi1>
    %62 = vector.broadcast %61 : vector<1x384xi1> to vector<8x384xi1>
    %63 = vector.broadcast %cst_39 : f32 to vector<8x384xf32>
    %64 = arith.select %62, %60, %63 : vector<8x384xi1>, vector<8x384xf32>
    %65 = vector.extract_strided_slice %58 {offsets = [0, 0], sizes = [8, 256], strides = [1, 1]} : vector<8x384xf32> to vector<8x256xf32>
    %c0_40 = arith.constant 0 : index
    %c0_41 = arith.constant 0 : index
    %66 = vector.load %arg13[%c0_40, %c0_41] : memref<72x256xf32, #tpu.memory_space<vmem>>, vector<8x256xf32>
    tpu.vector_store %arg13[%c0_40, %c0_41], %65 {strides = array<i32>} : memref<72x256xf32, #tpu.memory_space<vmem>>, vector<8x256xf32>,
    %67 = vector.extract_strided_slice %52 {offsets = [0, 0], sizes = [8, 256], strides = [1, 1]} : vector<8x384xf32> to vector<8x256xf32>
    %c8_42 = arith.constant 8 : index
    %c0_43 = arith.constant 0 : index
    %68 = vector.load %arg13[%c8_42, %c0_43] : memref<72x256xf32, #tpu.memory_space<vmem>>, vector<8x256xf32>
    tpu.vector_store %arg13[%c8_42, %c0_43], %67 {strides = array<i32>} : memref<72x256xf32, #tpu.memory_space<vmem>>, vector<8x256xf32>,
    %69 = vector.extract_strided_slice %64 {offsets = [0, 0], sizes = [8, 256], strides = [1, 1]} : vector<8x384xf32> to vector<8x256xf32>
    %c16_44 = arith.constant 16 : index
    %c0_45 = arith.constant 0 : index
    %70 = vector.load %arg13[%c16_44, %c0_45] : memref<72x256xf32, #tpu.memory_space<vmem>>, vector<8x256xf32>
    tpu.vector_store %arg13[%c16_44, %c0_45], %69 {strides = array<i32>} : memref<72x256xf32, #tpu.memory_space<vmem>>, vector<8x256xf32>,
    %71 = vector.extract_strided_slice %58 {offsets = [0, 16], sizes = [8, 256], strides = [1, 1]} : vector<8x384xf32> to vector<8x256xf32>
    %c24_46 = arith.constant 24 : index
    %c0_47 = arith.constant 0 : index
    %72 = vector.load %arg13[%c24_46, %c0_47] : memref<72x256xf32, #tpu.memory_space<vmem>>, vector<8x256xf32>
    tpu.vector_store %arg13[%c24_46, %c0_47], %71 {strides = array<i32>} : memref<72x256xf32, #tpu.memory_space<vmem>>, vector<8x256xf32>,
    %73 = vector.extract_strided_slice %52 {offsets = [0, 16], sizes = [8, 256], strides = [1, 1]} : vector<8x384xf32> to vector<8x256xf32>
    %c32_48 = arith.constant 32 : index
    %c0_49 = arith.constant 0 : index
    %74 = vector.load %arg13[%c32_48, %c0_49] : memref<72x256xf32, #tpu.memory_space<vmem>>, vector<8x256xf32>
    tpu.vector_store %arg13[%c32_48, %c0_49], %73 {strides = array<i32>} : memref<72x256xf32, #tpu.memory_space<vmem>>, vector<8x256xf32>,
    %75 = vector.extract_strided_slice %64 {offsets = [0, 16], sizes = [8, 256], strides = [1, 1]} : vector<8x384xf32> to vector<8x256xf32>
    %c40_50 = arith.constant 40 : index
    %c0_51 = arith.constant 0 : index
    %76 = vector.load %arg13[%c40_50, %c0_51] : memref<72x256xf32, #tpu.memory_space<vmem>>, vector<8x256xf32>
    tpu.vector_store %arg13[%c40_50, %c0_51], %75 {strides = array<i32>} : memref<72x256xf32, #tpu.memory_space<vmem>>, vector<8x256xf32>,
    %77 = vector.extract_strided_slice %58 {offsets = [0, 32], sizes = [8, 256], strides = [1, 1]} : vector<8x384xf32> to vector<8x256xf32>
    %c48_52 = arith.constant 48 : index
    %c0_53 = arith.constant 0 : index
    %78 = vector.load %arg13[%c48_52, %c0_53] : memref<72x256xf32, #tpu.memory_space<vmem>>, vector<8x256xf32>
    tpu.vector_store %arg13[%c48_52, %c0_53], %77 {strides = array<i32>} : memref<72x256xf32, #tpu.memory_space<vmem>>, vector<8x256xf32>,
    %79 = vector.extract_strided_slice %52 {offsets = [0, 32], sizes = [8, 256], strides = [1, 1]} : vector<8x384xf32> to vector<8x256xf32>
    %c56_54 = arith.constant 56 : index
    %c0_55 = arith.constant 0 : index
    %80 = vector.load %arg13[%c56_54, %c0_55] : memref<72x256xf32, #tpu.memory_space<vmem>>, vector<8x256xf32>
    tpu.vector_store %arg13[%c56_54, %c0_55], %79 {strides = array<i32>} : memref<72x256xf32, #tpu.memory_space<vmem>>, vector<8x256xf32>,
    %81 = vector.extract_strided_slice %64 {offsets = [0, 32], sizes = [8, 256], strides = [1, 1]} : vector<8x384xf32> to vector<8x256xf32>
    %c64_56 = arith.constant 64 : index
    %c0_57 = arith.constant 0 : index
    %82 = vector.load %arg13[%c64_56, %c0_57] : memref<72x256xf32, #tpu.memory_space<vmem>>, vector<8x256xf32>
    tpu.vector_store %arg13[%c64_56, %c0_57], %81 {strides = array<i32>} : memref<72x256xf32, #tpu.memory_space<vmem>>, vector<8x256xf32>,
    %c0_i32 = arith.constant 0 : i32
    %83 = arith.cmpi eq, %arg1, %c0_i32 : i32
    %84 = arith.extui %83 : i1 to i32
    %c0_i32_58 = arith.constant 0 : i32
    %85 = arith.cmpi ne, %84, %c0_i32_58 : i32
    scf.if %85 {
      %cst_77 = arith.constant 0.000000e+00 : f32
      %106 = vector.broadcast %cst_77 : f32 to vector<24x16xf32>
      %c0_78 = arith.constant 0 : index
      %c0_79 = arith.constant 0 : index
      %107 = vector.load %arg13[%c0_78, %c0_79] : memref<72x256xf32, #tpu.memory_space<vmem>>, vector<24x16xf32>
      tpu.vector_store %arg13[%c0_78, %c0_79], %106 {strides = array<i32>} : memref<72x256xf32, #tpu.memory_space<vmem>>, vector<24x16xf32>,
    } else {
    }
    %c0_i32_59 = arith.constant 0 : i32
    %86 = arith.cmpi eq, %arg1, %c0_i32_59 : i32
    %87 = arith.extui %86 : i1 to i32
    %c0_i32_60 = arith.constant 0 : i32
    %88 = arith.cmpi ne, %87, %c0_i32_60 : i32
    scf.if %88 {
      %cst_77 = arith.constant 0.000000e+00 : f32
      %106 = vector.broadcast %cst_77 : f32 to vector<24x16xf32>
      %c48_78 = arith.constant 48 : index
      %c240 = arith.constant 240 : index
      %107 = vector.load %arg13[%c48_78, %c240] : memref<72x256xf32, #tpu.memory_space<vmem>>, vector<24x16xf32>
      tpu.vector_store %arg13[%c48_78, %c240], %106 {strides = array<i32>} : memref<72x256xf32, #tpu.memory_space<vmem>>, vector<24x16xf32>,
    } else {
    }
    %c0_61 = arith.constant 0 : index
    %c0_62 = arith.constant 0 : index
    %89 = vector.load %arg4[%c0_61, %c0_62] : memref<4x72xf32, #tpu.memory_space<vmem>>, vector<4x72xf32>
    %c0_63 = arith.constant 0 : index
    %c0_64 = arith.constant 0 : index
    %90 = vector.load %arg13[%c0_63, %c0_64] : memref<72x256xf32, #tpu.memory_space<vmem>>, vector<72x256xf32>
    %cst_65 = arith.constant dense<0.000000e+00> : vector<4x256xf32>
    %91 = tpu.matmul %89, %90, %cst_65 {dimension_numbers = #tpu.dot_dimension_numbers<[1], [0], [0], [1], [0, 0, 1, 1], [], []>} : vector<4x72xf32>, vector<72x256xf32>, vector<4x256xf32> -> vector<4x256xf32>
    %c0_66 = arith.constant 0 : index
    %c0_67 = arith.constant 0 : index
    %92 = vector.load %arg7[%c0_66, %c0_67] : memref<4x1xf32, #tpu.memory_space<vmem>>, vector<4x1xf32>
    %93 = vector.broadcast %92 : vector<4x1xf32> to vector<4x256xf32>
    %94 = arith.mulf %91, %93 : vector<4x256xf32>
    %c0_68 = arith.constant 0 : index
    %c0_69 = arith.constant 0 : index
    %95 = vector.load %arg8[%c0_68, %c0_69] : memref<4x1xf32, #tpu.memory_space<vmem>>, vector<4x1xf32>
    %96 = vector.broadcast %95 : vector<4x1xf32> to vector<4x256xf32>
    %97 = arith.addf %94, %96 : vector<4x256xf32>
    %c0_70 = arith.constant 0 : index
    %c0_71 = arith.constant 0 : index
    %c0_72 = arith.constant 0 : index
    %98 = vector.load %arg2[%c0_70, %c0_71, %c0_72] : memref<1x8x256xf32, #tpu.memory_space<vmem>>, vector<1x8x256xf32>
    %99 = vector.shape_cast %98 : vector<1x8x256xf32> to vector<8x256xf32>
    %100 = vector.extract_strided_slice %99 {offsets = [0, 0], sizes = [4, 256], strides = [1, 1]} : vector<8x256xf32> to vector<4x256xf32>
    %101 = arith.addf %97, %100 : vector<4x256xf32>
    %cst_73 = arith.constant 0.000000e+00 : f32
    %102 = vector.broadcast %cst_73 : f32 to vector<4x256xf32>
    %103 = arith.maximumf %101, %102 : vector<4x256xf32>
    %104 = vector.shape_cast %103 : vector<4x256xf32> to vector<1x4x256xf32>
    %c0_74 = arith.constant 0 : index
    %c0_75 = arith.constant 0 : index
    %c0_76 = arith.constant 0 : index
    %105 = vector.load %arg10[%c0_74, %c0_75, %c0_76] : memref<1x4x256xf32, #tpu.memory_space<vmem>>, vector<1x4x256xf32>
    tpu.vector_store %arg10[%c0_74, %c0_75, %c0_76], %104 {strides = array<i32>} : memref<1x4x256xf32, #tpu.memory_space<vmem>>, vector<1x4x256xf32>,
    return
  }
  func.func @transform_0(%arg0: i32, %arg1: i32) -> (i32, i32, i32) {
    %c0_i32 = arith.constant 0 : i32
    %c0_i32_0 = arith.constant 0 : i32
    %c0_i32_1 = arith.constant 0 : i32
    return %arg0, %c0_i32, %c0_i32_0 : i32, i32, i32
  }
  func.func @transform_1(%arg0: i32, %arg1: i32) -> (i32, i32) {
    %c0_i32 = arith.constant 0 : i32
    %c0_i32_0 = arith.constant 0 : i32
    %c0_i32_1 = arith.constant 0 : i32
    return %c0_i32, %c0_i32_0 : i32, i32
  }
  func.func @transform_2(%arg0: i32, %arg1: i32) -> (i32, i32) {
    %c0_i32 = arith.constant 0 : i32
    %c0_i32_0 = arith.constant 0 : i32
    %c0_i32_1 = arith.constant 0 : i32
    return %c0_i32, %c0_i32_0 : i32, i32
  }
  func.func @transform_3(%arg0: i32, %arg1: i32) -> (i32, i32) {
    %c0_i32 = arith.constant 0 : i32
    %c0_i32_0 = arith.constant 0 : i32
    %c0_i32_1 = arith.constant 0 : i32
    return %c0_i32, %c0_i32_0 : i32, i32
  }
  func.func @transform_4(%arg0: i32, %arg1: i32) -> (i32, i32) {
    %c0_i32 = arith.constant 0 : i32
    %c0_i32_0 = arith.constant 0 : i32
    %c0_i32_1 = arith.constant 0 : i32
    return %c0_i32, %c0_i32_0 : i32, i32
  }
  func.func @transform_5(%arg0: i32, %arg1: i32) -> (i32, i32) {
    %c0_i32 = arith.constant 0 : i32
    %c0_i32_0 = arith.constant 0 : i32
    %c0_i32_1 = arith.constant 0 : i32
    return %c0_i32, %c0_i32_0 : i32, i32
  }
  func.func @transform_6(%arg0: i32, %arg1: i32) -> (i32, i32) {
    %c0_i32 = arith.constant 0 : i32
    %c0_i32_0 = arith.constant 0 : i32
    %c0_i32_1 = arith.constant 0 : i32
    return %c0_i32, %c0_i32_0 : i32, i32
  }
  func.func @transform_7(%arg0: i32, %arg1: i32) -> (i32, i32) {
    %c0_i32 = arith.constant 0 : i32
    %c0_i32_0 = arith.constant 0 : i32
    %c0_i32_1 = arith.constant 0 : i32
    return %c0_i32, %c0_i32_0 : i32, i32
  }
  func.func @transform_8(%arg0: i32, %arg1: i32) -> (i32, i32, i32) {
    %c0_i32 = arith.constant 0 : i32
    %c0_i32_0 = arith.constant 0 : i32
    return %arg0, %c0_i32, %arg1 : i32, i32, i32
  }
}

</mosaic_0001>

<bundles_post_ra>
// kernel: tpu_custom_call.1
= control target key start
LH: loop header
LB: loop body
LE: loop exit
PB: predicated region body
PF: predicated region fallthrough
CT: control target
= control target key end

     0   :  { %13 = vsyncpa [#allocation6], 0  ;;  %s1980_s0 = inlined_call_operand.hbm [shape: f32[2,8,256], index: 0, kind: input, shape index: {}]   ;;  %s1981_s1 = inlined_call_operand.vmem [shape: f32[8,72], index: 1, kind: input, shape index: {}]   ;;  %s1982_s2 = inlined_call_operand.vmem [shape: f32[4,72], index: 2, kind: input, shape index: {}]   ;;  %s1983_s3 = inlined_call_operand.vmem [shape: f32[8,1], index: 3, kind: input, shape index: {}]   ;;  %s1984_s4 = inlined_call_operand.vmem [shape: f32[8,1], index: 4, kind: input, shape index: {}]   ;;  %s1985_s5 = inlined_call_operand.vmem [shape: f32[4,1], index: 5, kind: input, shape index: {}]   ;;  %s1986_s6 = inlined_call_operand.vmem [shape: f32[4,1], index: 6, kind: input, shape index: {}]   ;;  %s1987_s7 = inlined_call_operand.vmem [shape: f32[2,512], index: 7, kind: input, shape index: {}]   ;;  %s1988_s8 = inlined_call_operand.hbm [shape: f32[2,4,256], index: 8, kind: output, shape index: {}]  }
   0x1   :  { %15 = vsyncpa [#allocation6 + $0x1], 0 }
   0x2   :  { %16 = vsyncpa [#allocation7], 0 }
   0x3   :  { %18 = vsyncpa [#allocation7 + $0x1], 0  ;;  %s1523_s27 = smov 0   ;;  %s1525_s28 = smov 0  }
   0x4   :  { %s1527_s29 = smov 0   ;;  %s1529_s30 = smov 0  }
   0x5   :  { %s1531_s9 = smov 0   ;;  %s1533_s10 = smov 0  }
   0x6 LB: > { %s1104_s11 = sadd.s32 4294967295, %s1464_s10   ;;  %s1105_s12 = sadd.s32 4294967294, %s1464_s10   ;;  %s1464_s10 = sphi %s1533_s10, %s24_s10   ;;  %s1460_s9 = sphi %s1531_s9, %s2010_s9   ;;  %s1456_s30 = sphi %s1529_s30, %s2009_s30   ;;  %s1452_s29 = sphi %s1527_s29, %s2008_s29   ;;  %s1448_s28 = sphi %s1525_s28, %s2007_s28   ;;  %s1444_s27 = sphi %s1523_s27, %s2006_s27  }
   0x7   : > { %s36_s13 = sadd.s32 1, %s1460_s9  ;;  %s43_s14 = sadd.s32 1, %s1452_s29 }
   0x8   : > { %p38_p0 = scmp.ge.s32.totalorder %s36_s13, 2  ;;  %p50_p1 = scmp.ne.s32.totalorder %s1452_s29, %s1448_s28 }
   0x9   : > { %p51_p2 = scmp.eq.s32.totalorder %s1464_s10, 0  ;;  %p56_p3 = scmp.ne.s32.totalorder %s1448_s28, %s1444_s27 }
   0xa   : > { %s2012_s13 = smov (%p38_p0, %s36_s13), 0  ;;  %p57_p5 = scmp.eq.s32.totalorder %s1104_s11, 0 }
   0xb   : > { %p1564_p4 = por %p51_p2, %p50_p1  ;;  %s40_s16 = ssub.s32 %s1460_s9, %s2012_s13 }
   0xc   : > { %p229_p6 = scmp.eq.s32.totalorder %s1104_s11, 1  ;;  %p41_p7 = scmp.eq.s32.totalorder %s40_s16, 0 }
   0xd   : > { %p1570_p8 = por %p57_p5, %p56_p3  ;;  %p235_p10 = scmp.eq.s32.totalorder %s1105_s12, 1 }
   0xe   : > { %p1574_p9 = por %p229_p6, %p50_p1  ;;  %p1224_p13 = scmp.lt.s32.totalorder %s1464_s10, 2 }
   0xf   : > { %s1579_s19 = scalar_select %p41_p7, %s1452_s29, %s43_s14  }
  0x10   : > { %s1992_s18 = scalar_select %p1574_p9, 1, 0 }
  0x11   : > { %p1581_p11 = por %p235_p10, %p56_p3  ;;  %s276_s21 = sand.u32 1, %s1452_s29  }
  0x12   : > { %s1108_s22 = sshll.u32 %s276_s21, 4  ;;  %s1123_s23 = sshll.u32 %s1460_s9, 8 }
  0x13   : > { %s1993_s20 = scalar_select %p1581_p11, 1, 0 }
  0x14   : > { %s1592_s26 = scalar_lea.hbm %s1980_s0, %s1123_s23  ;;  %s280_s11 = scalar_lea.vmem [#allocation5], %s1108_s22 }
  0x15   : > { %s288_s12 = sshll.u32 %s280_s11, 4  ;;  %p1598_p0 = pnand %p1224_p13, %p1564_p4  ;;  %s1594_s12 = int_to_ptr.vmem [resolvable:$true] %s288_s12 }
  0x16   : > { %s277_s16 = scalar_lea.sflag [#allocation6], %s276_s21  ;;  %s1352_s23 = scalar_lea.hbm %s1592_s26, 256 }
  0x17   : > { %p1353_p3 = scmp.ne.s32.totalorder %s1592_s26, %s1352_s23  ;;  %p1354_p5 = pneg %p1598_p0 }
  0x18   : > { %s1357_s15 = scalar_lea.hbm %s1980_s0, 512  ;;  %p1358_p4 = scmp.lt.u32.totalorder %s1592_s26, %s1980_s0 }
  0x19   : > { %p1355_p6 = pnand %p1354_p5, %p1353_p3  ;;  %p1359_p10 = scmp.lt.u32.totalorder %s1357_s15, %s1352_s23 }
  0x1a   : > { %p1361_p12 = scmp.lt.u32.totalorder %s1352_s23, %s1592_s26 }
  0x1b   : > { %p1356_p7 = pneg %p1355_p6  ;;  %p1360_p13 = por %p1359_p10, %p1358_p4 }
  0x1d   : > { %p1362_p1 = por %p1361_p12, %p1360_p13 }
  0x1f   : > { %p1363_p2 = pnand %p1362_p1, %p1356_p7 }
  0x21   : > { %1366 = shalt.err (!%p1363_p2)
}
  0x22   : > { %s1367_s21 = scalar_lea.vmem %s1594_s12, 256  ;;  %s1466_s22 = smov [#allocation5]  }
  0x23   : > { %p1368_p3 = scmp.ne.s32.totalorder %s1594_s12, %s1367_s21  ;;  %s1372_s24 = sshll.u32 %s1466_s22, 4  ;;  %s1373_s24 = int_to_ptr.vmem [resolvable:$false] %s1372_s24 }
  0x24   : > { %s1374_s25 = scalar_lea.vmem %s1373_s24, 512  ;;  %p1375_p9 = scmp.lt.s32.totalorder %s1594_s12, %s1373_s24 }
  0x25   : > { %p1370_p6 = pnand %p1368_p3, %p1354_p5  ;;  %p1376_p4 = scmp.lt.s32.totalorder %s1374_s25, %s1367_s21 }
  0x27   : > { %p1371_p11 = pneg %p1370_p6  ;;  %p1377_p10 = por %p1376_p4, %p1375_p9 }
  0x29   : > { %p1378_p12 = pnand %p1377_p10, %p1371_p11 }
  0x2b   : > { %1381 = shalt.err (!%p1378_p12)
}
  0x2c   : > { %1219 = dma.hbm_to_vmem [thread:$0]  (!%p1598_p0), %s1592_s26, 256, %s1594_s12, %s277_s16  }
  0x2d   : > { %p1995_p1 = scmp.lt.s32.totalorder %s1464_s10, 3  ;;  %p1996_p2 = scmp.ge.s32.totalorder %s1464_s10, 1 }
  0x2f   : > { %p294_p5 = pnand %p1996_p2, %p1995_p1 }
  0x30   : > { %s1634_s23 = sand.u32 (!%p294_p5), 1, %s1448_s28  }
  0x31   : > { %297 = sbr.rel (%p294_p5) target bundleno = 1180 (0x49c), region = 52  ;;  %s1112_s15 = sshll.u32 (!%p294_p5), %s1634_s23, 4 }
  0x32   : > { %s300_s11 = scalar_lea.sflag (!%p294_p5), [#allocation6], %s1634_s23  ;;  %s303_s21 = scalar_lea.vmem (!%p294_p5), [#allocation5], %s1112_s15 }
  0x38   : > { %1435 = dma.done.wait (%p1570_p8), %s300_s11, 256  }
  0x39   : > { %1437 = vsyncadd (%p1570_p8), %s300_s11, 4294967040  ;;  %vm337_vm0 = vcmask 261120   ;;  %v1467_v0 = vmov 0.0   ;;  %v1645_v1 = vld [vmem:[%s303_s21] sm:$0xff]  ;;  %s1468_s26 = smov 32   ;;  %v1648_v2 = vld [vmem:[%s303_s21 + $0x8] sm:$0xff]  ;;  %v374_v14 = vlaneseq }
  0x3a   : > { %338 = vst.msk [vmem:[#allocation2] sm:$0xff] %vm337_vm0, %v1467_v0  ;;  %665 = vmatprep.mubr.f32.mxu0 %v1467_v0  ;;  %343 = vrot.lane.b32.xlu0 %v1645_v1, %s1468_s26  ;;  %v1469_v3 = vmov 0   ;;  %vm351_vm1 = vcmask 1047808   ;;  %vm355_vm2 = vcmask 523520   ;;  %s1470_s17 = smov 127   ;;  %v1655_v7 = vld [vmem:[#allocation2 + $0x18] sm:$0xff] }
  0x3b   : > { %1344 = vset.pattern.permute.xlu0 %v1469_v3  ;;  %1345 = vset.pattern.permute.xlu1 %v1469_v3  ;;  %v1471_v8 = vmov 0.0|0.0   ;;  %s1472_s12 = smov 1   ;;  %s1473_s14 = smov 112   ;;  %v357_v15 = vld [vmem:[%s1987_s7] ss:$2 sm:$0xf] }
  0x3c   : > { %1182 = vmatprep.subr.bf16.mxu1 %v1471_v8  ;;  %s1474_s16 = smov 96   ;;  %v383_v16 = vshrl.u32 %v374_v14, 7  ;;  %vm358_vm3 = vcmp.gt.f32.partialorder %v357_v15, 0.5  ;;  %v1674_v19 = vand.u32 127, %v374_v14  ;;  %vm1475_vm6 = vmmov 1   ;;  %s1113_s21 = sshll.u32 %s1634_s23, 3 }
  0x3d   : > { %v381_v18 = vsel %vm358_vm3, 1, %v1469_v3  ;;  %v1114_v27 = vld [vmem:[%s1987_s7 + $0x1] ss:$2 sm:$0xf]  ;;  %vm1476_vm3 = vmmov 0   ;;  %s335_s22 = scalar_lea.vmem [#allocation8], %s1113_s21 }
  0x3e   : > { %345 = vrot.lane.b32.xlu0 %v1648_v2, %s1468_s26  ;;  %v388_v17 = vsub.s32 1, %v383_v16  ;;  %v384_v21 = vsub.s32 0, %v383_v16  ;;  %v392_v22 = vsub.s32 2, %v383_v16  ;;  %vm376_vm4 = vcmp.lt.s32.totalorder %v1674_v19, 1  ;;  %1159 = vmatprep.mubr.msk.f32.mxu1 %vm1476_vm3, %v1467_v0  ;;  %s1124_s26 = sshll.u32 %s1456_s30, 7  ;;  %s1023_s24 = sshll.u32 %s335_s22, 4  ;;  %s1933_s24 = int_to_ptr.vmem [resolvable:$true] %s1023_s24 }
  0x3f   : > { %vm361_vm8 = vcmp.gt.f32.partialorder %v1114_v27, 0.5  ;;  %v396_v33 = vsub.s32 3, %v383_v16  ;;  %vm414_vm13 = vcmp.lt.s32.totalorder %v1674_v19, 127  ;;  %vm878_vm3 = vcmask 130048   ;;  %s1382_s15 = scalar_lea.vmem %s1933_s24, 128  ;;  %p2003_p9 = scmp.ne.s32.totalorder %s1992_s18, 0 }
  0x40   : > { %v1676_v20 = vrot.slane %v381_v18, %v388_v17  ;;  %v1680_v24 = vrot.slane %v381_v18, %v384_v21  ;;  %v1685_v28 = vrot.slane %v381_v18, %v392_v22  ;;  %v419_v36 = vsel %vm361_vm8, 1, %v1469_v3  ;;  %p1383_p8 = scmp.ne.s32.totalorder %s1933_s24, %s1382_s15  ;;  %s1477_s30 = smov [#allocation8]  }
  0x41   : > { %v1710_v39 = vrot.slane %v419_v36, %v384_v21  ;;  %v435_v40 = vrot.slane %v419_v36, %v396_v33  ;;  %v397_v46 = vrot.slane %v381_v18, %v396_v33  ;;  %v1724_v51 = vrot.slane %v419_v36, %v388_v17 }
  0x42   : > { %vm399_vm5 = vcmp.eq.s32.totalorder %v1676_v20, 1  ;;  %vm398_vm9 = vcmp.eq.s32.totalorder %v1680_v24, 1  ;;  %vm400_vm10 = vcmp.eq.s32.totalorder %v1685_v28, 1  ;;  %v1726_v52 = vrot.slane %v419_v36, %v392_v22  ;;  %p1384_p11 = pnand %p1383_p8, %p2003_p9 }
  0x43   : > { %vm1692_vm7 = vmpackc.low %vm1475_vm6, %vm399_vm5  ;;  %vm436_vm14 = vcmp.eq.s32.totalorder %v1710_v39, 1  ;;  %vm439_vm15 = vcmp.eq.s32.totalorder %v435_v40, 1  ;;  %vm465_vm8 = vcmask 916480  }
  0x44   : > { %vm1166_vm11 = vmpackc.low %vm1475_vm6, %vm398_vm9  ;;  %p1385_p0 = pneg %p1384_p11 }
  0x45   : > { %vm1184_vm12 = vmpackc.low %vm1475_vm6, %vm400_vm10 }
  0xac   : > { %v344_v4 = vpop.permute.xlu0 %343 }
  0xad   : > { %352 = vst.msk [vmem:[#allocation2] sm:$0xff] %vm351_vm1, %v344_v4  ;;  %vm437_vm1 = vcmp.eq.s32.totalorder %v1724_v51, 1 }
  0xb0   : > { %v346_v5 = vpop.permute.xlu0 %345 }
  0xb1   : > { %v347_v6 = vsel %vm337_vm0, %v344_v4, %v346_v5  ;;  %354 = vst.msk [vmem:[#allocation2 + $0x10] sm:$0xff] %vm337_vm0, %v346_v5  ;;  %vm401_vm0 = vcmp.eq.s32.totalorder %v397_v46, 1 }
  0xb2   : > { %356 = vst.msk [vmem:[#allocation2 + $0x10] sm:$0xff] %vm355_vm2, %v1467_v0  ;;  %408 = vrot.lane.b32.xlu0 %v347_v6, %s1470_s17  ;;  %vm438_vm2 = vcmp.eq.s32.totalorder %v1726_v52, 1 }
  0xb4   : > { %v1658_v9 = vld [vmem:[#allocation2] sm:$0xff] }
  0xb5   : > { %v1284_v10 = vpack.i.bf16 %v347_v6, %v1658_v9 }
  0xb6   : > { %412 = vrot.lane.b32.xlu0 %v1655_v7, %s1470_s17 }
  0xb7   : > { %1285 = vrot.lane.b32.xlu1 %v1284_v10, %s1472_s12 }
  0xb9   : > { %v364_v11 = vld [vmem:[#allocation2 + $0x10] sm:$0xff] }
  0xba   : > { %v1289_v12 = vpack.i.bf16 %v1655_v7, %v364_v11  ;;  %v1294_v13 = vpack.i.bf16 %v364_v11, %v347_v6 }
  0xbc   : > { %1290 = vrot.lane.b32.xlu1 %v1289_v12, %s1472_s12  ;;  %1295 = vrot.lane.b32.xlu0 %v1294_v13, %s1473_s14  ;;  %v751_v12 = vld [vmem:[%s1984_s4] sm:$0xff] }
  0xc0   : > { %410 = vrot.lane.b32.xlu1 %v364_v11, %s1470_s17 }
  0xc4   : > { %406 = vrot.lane.b32.xlu1 %v1658_v9, %s1470_s17 }
  0xc8   : > { %1300 = vrot.lane.b32.xlu1 %v1294_v13, %s1474_s16 }
 0x124   : > { %v409_v41 = vpop.permute.xlu0 %408 }
 0x128   : > { %v413_v49 = vpop.permute.xlu0 %412 }
 0x129   : > { %v1286_v23 = vpop.permute.xlu1 %1285 }
 0x12a   : > { %v1288_v25 = vunpack.i.h.bf16 %v1286_v23  ;;  %v1287_v26 = vunpack.i.l.bf16 %v1286_v23 }
 0x12c   : > { %v379_v29 = vsel %vm376_vm4, %v1287_v26, %v1288_v25 }
 0x12d   : > { %v1162_v31 = vpack.c.bf16 %v347_v6, %v379_v29  ;;  %v403_v50 = vsel %vm399_vm5, %v379_v29, 0.0 }
 0x12e   : > { %v1291_v32 = vpop.permute.xlu1 %1290  ;;  %v1296_v13 = vpop.permute.xlu0 %1295 }
 0x12f   : > { %v1293_v34 = vunpack.i.h.bf16 %v1291_v32  ;;  %v1292_v35 = vunpack.i.l.bf16 %v1291_v32  ;;  %1164 = vmatprep.subr.msk.bf16.mxu0 %vm1692_vm7, %v1162_v31  ;;  %v1298_v31 = vunpack.i.h.bf16 %v1296_v13  ;;  %v1297_v32 = vunpack.i.l.bf16 %v1296_v13 }
 0x131   : > { %v380_v37 = vsel %vm376_vm4, %v1293_v34, %v1287_v26  ;;  %v378_v38 = vsel %vm376_vm4, %v1288_v25, %v1292_v35  ;;  %v377_v57 = vsel %vm376_vm4, %v1292_v35, %v1293_v34 }
 0x132   : > { %v411_v42 = vpop.permute.xlu1 %410  ;;  %v1165_v43 = vpack.c.bf16 %v1658_v9, %v380_v37  ;;  %v1183_v44 = vpack.c.bf16 %v364_v11, %v378_v38  ;;  %v402_v45 = vsel %vm398_vm9, %v380_v37, 0.0  ;;  %v404_v48 = vsel %vm400_vm10, %v378_v38, 0.0  ;;  %v742_v11 = vld [vmem:[%s1983_s3] sm:$0xff] }
 0x133   : > { %v1309_v47 = vpack.i.bf16 %v1658_v9, %v402_v45  ;;  %v1314_v56 = vpack.i.bf16 %v404_v48, %v403_v50  ;;  %v405_v61 = vsel %vm401_vm0, %v377_v57, 0.0  ;;  %v1745_v62 = vsel %vm414_vm13, %v411_v42, %v413_v49  ;;  %vm1188_vm0 = vmpackc.low %vm1475_vm6, %vm438_vm2 }
 0x134   : > { %1167 = vmatpush1.bf16.msk.msra.mxu0 %vm1166_vm11, %v1165_v43  ;;  %1185 = vmatpush3.bf16.msk.msra.mxu1 %vm1184_vm12, %v1183_v44  ;;  %v416_v63 = vsel %vm414_vm13, %v409_v41, %v411_v42  ;;  %v1319_v4 = vpack.i.bf16 %v405_v61, %v402_v45  ;;  %v442_v6 = vsel %vm438_vm2, %v1745_v62, 0.0  ;;  %vm1781_vm11 = vmpackc.low %vm1475_vm6, %vm437_vm1  ;;  %vm525_vm12 = vcmask 785408  }
 0x135   : > { %1310 = vrot.lane.b32.xlu0 %v1309_v47, %s1474_s16  ;;  %1186 = vmatprep.subr.bf16.mxu1 %v1471_v8  ;;  %v441_v5 = vsel %vm437_vm1, %v416_v63, 0.0 }
 0x136   : > { %v407_v53 = vpop.permute.xlu1 %406  ;;  %v1324_v10 = vpack.i.bf16 %v442_v6, %v441_v5 }
 0x137   : > { %v418_v54 = vsel %vm414_vm13, %v413_v49, %v407_v53  ;;  %v1732_v55 = vsel %vm414_vm13, %v407_v53, %v409_v41 }
 0x138   : > { %v443_v58 = vsel %vm439_vm15, %v418_v54, 0.0  ;;  %v440_v59 = vsel %vm436_vm14, %v1732_v55, 0.0  ;;  %vm1790_vm15 = vmpackc.low %vm1475_vm6, %vm436_vm14  ;;  %v488_v54 = vsel %vm465_vm8, %v1297_v32, %v1298_v31  ;;  %vm597_vm6 = vcmask 588800  }
 0x139   : > { %v1304_v60 = vpack.i.bf16 %v443_v58, %v1655_v7  ;;  %1315 = vrot.lane.b32.xlu0 %v1314_v56, %s1473_s14  ;;  %v1329_v3 = vpack.i.bf16 %v440_v59, %v1658_v9  ;;  %v1339_v9 = vpack.i.bf16 %v1655_v7, %v405_v61 }
 0x13a   : > { %v1775_v14 = vpop.permute.xlu1 %1300 }
 0x13b   : > { %1305 = vrot.lane.b32.xlu1 %v1304_v60, %s1473_s14  ;;  %v1303_v42 = vunpack.i.h.bf16 %v1775_v14  ;;  %v1302_v43 = vunpack.i.l.bf16 %v1775_v14 }
 0x13d   : > { %1330 = vrot.lane.b32.xlu0 %v1329_v3, %s1473_s14 }
 0x13f   : > { %1320 = vrot.lane.b32.xlu1 %v1319_v4, %s1473_s14 }
 0x141   : > { %1335 = vrot.lane.b32.xlu0 %v1314_v56, %s1474_s16 }
 0x143   : > { %1325 = vrot.lane.b32.xlu1 %v1324_v10, %s1473_s14 }
 0x145   : > { %554 = vrot.lane.b32.xlu0 %v441_v5, %s1474_s16 }
 0x147   : > { %1340 = vrot.lane.b32.xlu1 %v1339_v9, %s1474_s16  ;;  %v544_v9 = vsel %vm525_vm12, %v1302_v43, %v1303_v42 }
 0x149   : > { %552 = vrot.lane.b32.xlu0 %v440_v59, %s1474_s16 }
 0x14b   : > { %556 = vrot.lane.b32.xlu1 %v442_v6, %s1474_s16 }
 0x14d   : > { %745 = vperm.xlu0 %1344, %v742_v11  }
 0x14f   : > { %558 = vrot.lane.b32.xlu1 %v443_v58, %s1474_s16 }
 0x153   : > { %754 = vperm.xlu1 %1345, %v751_v12  }
 0x1a7   : > { %v1773_v7 = vpop.permute.xlu0 %1310 }
 0x1a8   : > { %v1313_v53 = vunpack.i.h.bf16 %v1773_v7  ;;  %v1312_v61 = vunpack.i.l.bf16 %v1773_v7 }
 0x1ab   : > { %v1316_v15 = vpop.permute.xlu0 %1315 }
 0x1ac   : > { %v1318_v16 = vunpack.i.h.bf16 %v1316_v15  ;;  %v1317_v17 = vunpack.i.l.bf16 %v1316_v15 }
 0x1ad   : > { %v1306_v18 = vpop.permute.xlu1 %1305 }
 0x1ae   : > { %v467_v21 = vsel %vm465_vm8, %v1317_v17, %v1318_v16  ;;  %v1307_v33 = vunpack.i.l.bf16 %v1306_v18  ;;  %v1308_v47 = vunpack.i.h.bf16 %v1306_v18 }
 0x1af   : > { %v1168_v23 = vpack.c.bf16 %v467_v21, %v416_v63  ;;  %v1331_v25 = vpop.permute.xlu0 %1330 }
 0x1b0   : > { %v1332_v34 = vunpack.i.l.bf16 %v1331_v25  ;;  %v1333_v48 = vunpack.i.h.bf16 %v1331_v25  ;;  %v489_v56 = vsel %vm465_vm8, %v1298_v31, %v1307_v33 }
 0x1b1   : > { %v1321_v26 = vpop.permute.xlu1 %1320  ;;  %1170 = vmatprep.subr.msk.bf16.mxu0 %vm1781_vm11, %v1168_v23 }
 0x1b2   : > { %v1323_v27 = vunpack.i.h.bf16 %v1321_v26  ;;  %v1322_v29 = vunpack.i.l.bf16 %v1321_v26  ;;  %v487_v57 = vsel %vm465_vm8, %v1332_v34, %v1297_v32 }
 0x1b3   : > { %v1336_v35 = vpop.permute.xlu0 %1335 }
 0x1b4   : > { %v466_v37 = vsel %vm465_vm8, %v1322_v29, %v1317_v17  ;;  %v468_v38 = vsel %vm465_vm8, %v1318_v16, %v1323_v27  ;;  %v1338_v40 = vunpack.i.h.bf16 %v1336_v35  ;;  %v1337_v41 = vunpack.i.l.bf16 %v1336_v35 }
 0x1b5   : > { %v1171_v44 = vpack.c.bf16 %v466_v37, %v1732_v55  ;;  %v1187_v45 = vpack.c.bf16 %v468_v38, %v1745_v62  ;;  %v1326_v46 = vpop.permute.xlu1 %1325  ;;  %v543_v16 = vsel %vm525_vm12, %v1313_v53, %v1302_v43 }
 0x1b6   : > { %v1328_v49 = vunpack.i.h.bf16 %v1326_v46  ;;  %v1327_v50 = vunpack.i.l.bf16 %v1326_v46  ;;  %v527_v60 = vsel %vm525_vm12, %v1337_v41, %v1338_v40  ;;  %v526_v12 = vsel %vm525_vm12, %v1312_v61, %v1337_v41 }
 0x1b7   : > { %1173 = vmatpush1.bf16.msk.msra.mxu0 %vm1790_vm15, %v1171_v44  ;;  %1189 = vmatpush3.bf16.msk.msra.mxu1 %vm1188_vm0, %v1187_v45  ;;  %v555_v5 = vpop.permute.xlu0 %554  ;;  %v1178_v11 = vpack.c.bf16 %v544_v9, %v527_v60  ;;  %v1180_v17 = vpack.c.bf16 %v543_v16, %v526_v12  ;;  %v987_v9 = vld [vmem:[%s1986_s6] sm:$0xf] }
 0x1b8   : > { %1190 = vmatprep.subr.bf16.mxu1 %v1471_v8  ;;  %v509_v55 = vsel %vm465_vm8, %v1327_v50, %v1328_v49  ;;  %v510_v58 = vsel %vm465_vm8, %v1328_v49, %v1308_v47  ;;  %v508_v59 = vsel %vm465_vm8, %v1333_v48, %v1327_v50 }
 0x1b9   : > { %v1341_v62 = vpop.permute.xlu1 %1340  ;;  %v1174_v63 = vpack.c.bf16 %v509_v55, %v488_v54  ;;  %v1191_v3 = vpack.c.bf16 %v510_v58, %v489_v56  ;;  %v1176_v4 = vpack.c.bf16 %v508_v59, %v487_v57 }
 0x1ba   : > { %v1343_v6 = vunpack.i.h.bf16 %v1341_v62  ;;  %v1342_v10 = vunpack.i.l.bf16 %v1341_v62 }
 0x1bb   : > { %1175 = vmatprep.subr.bf16.mxu0 %v1174_v63  ;;  %1192 = vmatpush3.bf16.msra.mxu1 %v1191_v3  ;;  %v553_v18 = vpop.permute.xlu0 %552 }
 0x1bc   : > { %1177 = vmatpush1.bf16.msra.mxu0 %v1176_v4  ;;  %1193 = vmatprep.subr.bf16.mxu1 %v1471_v8  ;;  %v528_v13 = vsel %vm525_vm12, %v1338_v40, %v1342_v10  ;;  %v545_v7 = vsel %vm525_vm12, %v1303_v42, %v1343_v6  ;;  %v569_v8 = vld [vmem:[%s1981_s1] sm:$0xff]  ;;  %v560_v26 = vsel %vm525_vm12, %v553_v18, %v555_v5 }
 0x1bd   : > { %v557_v14 = vpop.permute.xlu1 %556  ;;  %1179 = vmatprep.subr.bf16.mxu0 %v1178_v11  ;;  %v1194_v15 = vpack.c.bf16 %v545_v7, %v528_v13  ;;  %v979_v11 = vld [vmem:[%s1985_s5] sm:$0xf] }
 0x1be   : > { %v561_v21 = vsel %vm525_vm12, %v555_v5, %v557_v14 }
 0x1bf   : > { %1195 = vmatpush3.bf16.msra.mxu1 %v1194_v15 }
 0x1c0   : > { %1181 = vmatpush1.bf16.msra.mxu0 %v1180_v17  ;;  %1157 = vmatprep.subr.mxu1 %v1467_v0 }
 0x1c1   : > { %v559_v23 = vpop.permute.xlu1 %558  ;;  %617 = vmatprep.subr.mxu0 %v561_v21 }
 0x1c2   : > { %v562_v25 = vsel %vm525_vm12, %v557_v14, %v559_v23 }
 0x1c3   : > { %1158 = vmatpush3.msra.mxu1 %v562_v25 }
 0x1c4   : > { %618 = vmatpush1.msra.mxu0 %v560_v26  ;;  %1160 = vmatmul.mubr.msk.f32.vlgmr.msra.gmra.mrb[0].mxu1 %vm597_vm6, %v569_v8 }
 0x1c5   : > { %1115 = vmatmul.mubr.msk.f32.vlgmr.msra.gmra.mrb[0].mxu0 %vm597_vm6, %v569_v8 }
 0x1c6   : > { %972 = vmatprep.mubr.f32.mxu0 %v1467_v0 }
 0x1cc   : > { %v746_v27 = vpop.permute.xlu0 %745 }
 0x1d2   : > { %v755_v31 = vpop.permute.xlu1 %754 }
 0x297   : > { %v738_v29 = vpop.f32.mrb[0].mxu1 }
 0x298   : > { %v750_v32 = vmul.f32 %v746_v27, %v738_v29  ;;  %v667_v33 = vpop.f32.mrb[0].mxu0  ;;  %v1161_v34 = vpop.f32.mrb[1].mxu1 }
 0x299   : > { %v748_v35 = vmul.f32 %v746_v27, %v667_v33  ;;  %v669_v36 = vpop.f32.mrb[1].mxu0 }
 0x29a   : > { %v759_v37 = vadd.f32 %v755_v31, %v750_v32  ;;  %v749_v38 = vmul.f32 %v746_v27, %v669_v36 }
 0x29b   : > { %v757_v40 = vadd.f32 %v755_v31, %v748_v35 }
 0x29c   : > { %v762_v41 = vmax.f32 %v759_v37, 0.0  ;;  %v758_v42 = vadd.f32 %v755_v31, %v749_v38 }
 0x29d   : > { %v1831_v43 = vmax.f32 %v757_v40, 0.0 }
 0x29e   : > { %v761_v44 = vmax.f32 %v758_v42, 0.0  ;;  %767 = vrot.lane.b32.xlu1 %v762_v41, %s1472_s12 }
 0x29f   : > { %789 = vst [vmem:[#allocation4 + $0x10] sm:$0xff] %v1831_v43  ;;  %775 = vrot.lane.b32.xlu0 %v1831_v43, %s1470_s17 }
 0x2a0   : > { %880 = vst.msk [vmem:[#allocation4 + $0x10] sm:$0xff] %vm878_vm3, %v1467_v0 }
 0x2a2   : > { %763 = vrot.lane.b32.xlu1 %v1831_v43, %s1472_s12 }
 0x2a3   : > { %765 = vrot.lane.b32.xlu0 %v761_v44, %s1472_s12  ;;  %s1931_s12 = scalar_lea.hbm %s1988_s8, %s1124_s26 }
 0x2a6   : > { %777 = vrot.lane.b32.xlu1 %v761_v44, %s1470_s17 }
 0x2a7   : > { %779 = vrot.lane.b32.xlu0 %v762_v41, %s1470_s17  ;;  %v889_v28 = vld [vmem:[#allocation4 + $0x10] sm:$0xff] }
 0x2aa   : > { %815 = vrot.lane.b32.xlu1 %v762_v41, %s1473_s14 }
 0x2ab   : > { %811 = vrot.lane.b32.xlu0 %v1831_v43, %s1473_s14 }
 0x2ae   : > { %854 = vrot.lane.b32.xlu1 %v762_v41, %s1474_s16 }
 0x2af   : > { %813 = vrot.lane.b32.xlu0 %v761_v44, %s1473_s14 }
 0x2b3   : > { %852 = vrot.lane.b32.xlu0 %v761_v44, %s1474_s16 }
 0x310   : > { %v768_v45 = vpop.permute.xlu1 %767 }
 0x311   : > { %v776_v46 = vpop.permute.xlu0 %775 }
 0x314   : > { %v764_v47 = vpop.permute.xlu1 %763 }
 0x315   : > { %v771_v48 = vsel %vm376_vm4, %v768_v45, %v764_v47  ;;  %v766_v49 = vpop.permute.xlu0 %765 }
 0x316   : > { %v770_v50 = vsel %vm376_vm4, %v764_v47, %v766_v49  ;;  %v772_v53 = vsel %vm398_vm9, %v771_v48, 0.0  ;;  %v769_v54 = vsel %vm376_vm4, %v766_v49, %v768_v45  ;;  %vm882_vm4 = vcmask 1048448   ;;  %v886_v48 = vld [vmem:[%s1982_s2] sm:$0xf] }
 0x317   : > { %787 = vst [vmem:[#allocation4] sm:$0xff] %v772_v53  ;;  %796 = vrot.lane.b32.xlu1 %v772_v53, %s1473_s14  ;;  %838 = vrot.lane.b32.xlu0 %v772_v53, %s1474_s16  ;;  %v773_v56 = vsel %vm399_vm5, %v770_v50, 0.0  ;;  %v774_v60 = vsel %vm400_vm10, %v769_v54, 0.0  ;;  %v1347_v61 = vpack.c.bf16 %v761_v44, %v770_v50 }
 0x318   : > { %879 = vst.msk [vmem:[#allocation4] sm:$0xff] %vm878_vm3, %v1467_v0  ;;  %v778_v57 = vpop.permute.xlu1 %777 }
 0x319   : > { %v782_v55 = vsel %vm414_vm13, %v776_v46, %v778_v57  ;;  %v780_v24 = vpop.permute.xlu0 %779  ;;  %1348 = vmatprep.subr.msk.bf16.mxu0 %vm1692_vm7, %v1347_v61 }
 0x31a   : > { %v781_v58 = vsel %vm414_vm13, %v778_v57, %v780_v24  ;;  %v783_v59 = vsel %vm414_vm13, %v780_v24, %v776_v46  ;;  %v784_v20 = vsel %vm436_vm14, %v782_v55, 0.0 }
 0x31b   : > { %800 = vrot.lane.b32.xlu0 %v774_v60, %s1473_s14  ;;  %v786_v62 = vsel %vm438_vm2, %v783_v59, 0.0  ;;  %v785_v63 = vsel %vm437_vm1, %v781_v58, 0.0  ;;  %791 = vst [vmem:[#allocation4 + $0x20] sm:$0xff] %v784_v20 }
 0x31c   : > { %830 = vrot.lane.b32.xlu1 %v786_v62, %s1473_s14  ;;  %881 = vst.msk [vmem:[#allocation4 + $0x20] sm:$0xff] %vm878_vm3, %v1467_v0  ;;  %v816_v30 = vpop.permute.xlu1 %815 }
 0x31d   : > { %v812_v19 = vpop.permute.xlu0 %811 }
 0x31f   : > { %828 = vrot.lane.b32.xlu0 %v785_v63, %s1473_s14  ;;  %v887_v39 = vld [vmem:[#allocation4] sm:$0xff] }
 0x320   : > { %798 = vrot.lane.b32.xlu1 %v773_v56, %s1473_s14  ;;  %v1198_v3 = vpack.c.bf16 %v889_v28, %v887_v39  ;;  %v855_v5 = vpop.permute.xlu1 %854 }
 0x321   : > { %v814_v52 = vpop.permute.xlu0 %813 }
 0x322   : > { %v817_v4 = vsel %vm465_vm8, %v812_v19, %v814_v52  ;;  %v818_v51 = vsel %vm465_vm8, %v814_v52, %v816_v30  ;;  %1199 = vmatpush1.bf16.msra.mxu0 %v1198_v3 }
 0x323   : > { %840 = vrot.lane.b32.xlu0 %v773_v56, %s1474_s16  ;;  %v891_v16 = vld [vmem:[#allocation4 + $0x20] sm:$0xff] }
 0x324   : > { %826 = vrot.lane.b32.xlu1 %v784_v20, %s1473_s14  ;;  %s1007_s14 = scalar_lea.sflag [#allocation7], %s1634_s23 }
 0x325   : > { %v853_v6 = vpop.permute.xlu0 %852 }
 0x326   : > { %v857_v10 = vsel %vm525_vm12, %v853_v6, %v855_v5 }
 0x327   : > { %861 = vst [vmem:[#allocation4 + $0x78] sm:$0xff] %v857_v10  ;;  %864 = vrot.lane.b32.xlu0 %v785_v63, %s1474_s16 }
 0x328   : > { %884 = vst.msk [vmem:[#allocation4 + $0x78] sm:$0xff] %vm882_vm4, %v1467_v0  ;;  %842 = vrot.lane.b32.xlu1 %v774_v60, %s1474_s16 }
 0x32b   : > { %862 = vrot.lane.b32.xlu0 %v784_v20, %s1474_s16 }
 0x32c   : > { %850 = vrot.lane.b32.xlu1 %v1831_v43, %s1474_s16 }
 0x32f   : > { %990 = vperm.xlu0 %1344, %v987_v9   ;;  %v902_v42 = vld [vmem:[#allocation4 + $0x78] sm:$0xff] }
 0x330   : > { %866 = vrot.lane.b32.xlu1 %v786_v62, %s1474_s16  ;;  %s1386_s16 = sshll.u32 %s1477_s30, 4  ;;  %s1387_s16 = int_to_ptr.vmem [resolvable:$false] %s1386_s16 }
 0x331   : > { %s1388_s11 = scalar_lea.vmem %s1387_s16, 256  ;;  %p1389_p7 = scmp.lt.s32.totalorder %s1933_s24, %s1387_s16 }
 0x332   : > { %p1390_p13 = scmp.lt.s32.totalorder %s1388_s11, %s1382_s15 }
 0x334   : > { %982 = vperm.xlu1 %1345, %v979_v11   ;;  %p1391_p3 = por %p1390_p13, %p1389_p7 }
 0x336   : > { %p1392_p6 = pnand %p1391_p3, %p1385_p0 }
 0x389   : > { %v797_v12 = vpop.permute.xlu1 %796  ;;  %v839_v13 = vpop.permute.xlu0 %838 }
 0x38d   : > { %v801_v7 = vpop.permute.xlu0 %800 }
 0x38e   : > { %v831_v14 = vpop.permute.xlu1 %830 }
 0x391   : > { %v829_v15 = vpop.permute.xlu0 %828 }
 0x392   : > { %v833_v17 = vsel %vm465_vm8, %v829_v15, %v831_v14  ;;  %v799_v18 = vpop.permute.xlu1 %798 }
 0x393   : > { %v802_v21 = vsel %vm465_vm8, %v797_v12, %v799_v18  ;;  %v803_v23 = vsel %vm465_vm8, %v799_v18, %v801_v7  ;;  %v1204_v31 = vpack.c.bf16 %v833_v17, %v818_v51 }
 0x394   : > { %v1202_v8 = vpack.c.bf16 %v802_v21, %v891_v16  ;;  %v1350_v29 = vpack.c.bf16 %v803_v23, %v781_v58 }
 0x395   : > { %v841_v25 = vpop.permute.xlu0 %840 }
 0x396   : > { %v844_v26 = vsel %vm525_vm12, %v839_v13, %v841_v25  ;;  %v827_v27 = vpop.permute.xlu1 %826  ;;  %1351 = vmatprep.subr.msk.bf16.mxu0 %vm1781_vm11, %v1350_v29 }
 0x397   : > { %v832_v32 = vsel %vm465_vm8, %v827_v27, %v829_v15  ;;  %1203 = vmatpush1.bf16.msra.mxu0 %v1202_v8 }
 0x398   : > { %1205 = vmatprep.subr.bf16.mxu0 %v1204_v31  ;;  %v1206_v33 = vpack.c.bf16 %v832_v32, %v817_v4 }
 0x399   : > { %v865_v34 = vpop.permute.xlu0 %864 }
 0x39a   : > { %v843_v35 = vpop.permute.xlu1 %842 }
 0x39b   : > { %v845_v36 = vsel %vm525_vm12, %v841_v25, %v843_v35  ;;  %1207 = vmatpush1.bf16.msra.mxu0 %v1206_v33 }
 0x39c   : > { %849 = vst [vmem:[#allocation4 + $0x68] sm:$0xff] %v845_v36 }
 0x39d   : > { %883 = vst.msk [vmem:[#allocation4 + $0x68] sm:$0xff] %vm882_vm4, %v1467_v0  ;;  %v863_v37 = vpop.permute.xlu0 %862 }
 0x39e   : > { %v868_v38 = vsel %vm525_vm12, %v863_v37, %v865_v34  ;;  %v851_v22 = vpop.permute.xlu1 %850 }
 0x39f   : > { %v856_v40 = vsel %vm525_vm12, %v851_v22, %v853_v6 }
 0x3a0   : > { %v1210_v46 = vpack.c.bf16 %v856_v40, %v844_v26 }
 0x3a2   : > { %v867_v41 = vpop.permute.xlu1 %866 }
 0x3a3   : > { %v869_v43 = vsel %vm525_vm12, %v865_v34, %v867_v41 }
 0x3a4   : > { %873 = vst [vmem:[#allocation4 + $0x88] sm:$0xff] %v869_v43  ;;  %v900_v44 = vld [vmem:[#allocation4 + $0x68] sm:$0xff] }
 0x3a5   : > { %885 = vst.msk [vmem:[#allocation4 + $0x88] sm:$0xff] %vm882_vm4, %v1467_v0  ;;  %v1208_v45 = vpack.c.bf16 %v902_v42, %v900_v44 }
 0x3a7   : > { %1209 = vmatprep.subr.bf16.mxu0 %v1208_v45 }
 0x3a8   : > { %1211 = vmatpush1.bf16.msra.mxu0 %v1210_v46 }
 0x3ac   : > { %v904_v47 = vld [vmem:[#allocation4 + $0x88] sm:$0xff] }
 0x3ad   : > { %924 = vmatprep.subr.mxu0 %v904_v47 }
 0x3ae   : > { %925 = vmatpush1.msra.mxu0 %v868_v38  ;;  %v991_v0 = vpop.permute.xlu0 %990 }
 0x3af   : > { %1117 = vmatmul.mubr.msk.f32.vlgmr.msra.gmra.mrb[2].mxu0 %vm597_vm6, %v886_v48 }
 0x3b3   : > { %v983_v49 = vpop.permute.xlu1 %982 }
 0x482   : > { %v974_v50 = vpop.f32.mrb[2].mxu0 }
 0x483   : > { %v985_v53 = vmul.f32 %v983_v49, %v974_v50  ;;  %v976_v54 = vpop.f32.mrb[3].mxu0 }
 0x484   : > { %v986_v56 = vmul.f32 %v983_v49, %v976_v54 }
 0x485   : > { %v993_v57 = vadd.f32 %v991_v0, %v985_v53 }
 0x486   : > { %v994_v55 = vadd.f32 %v991_v0, %v986_v56 }
 0x487   : > { %v997_v24 = vadd.f32 %v993_v57, %v1645_v1 }
 0x488   : > { %v998_v58 = vadd.f32 %v994_v55, %v1648_v2 }
 0x489   : > { %v999_v59 = vmax.f32 %v997_v24, 0.0 }
 0x48a   : > { %v1000_v60 = vmax.f32 %v998_v58, 0.0 }
 0x48c   : > { %v1003_v61 = vcombine.low %v999_v59, %v1000_v60 }
 0x48e   : > { %1005 = vst [vmem:[%s335_s22] sm:$0xff] %v1003_v61 }
 0x48f   : > { %1395 = shalt.err (!%p1392_p6)
}
 0x490   : > { %s1396_s23 = scalar_lea.hbm %s1931_s12, 128  ;;  %s1400_s22 = scalar_lea.hbm %s1988_s8, 256 }
 0x491   : > { %p1397_p4 = scmp.ne.s32.totalorder %s1931_s12, %s1396_s23  ;;  %p1401_p1 = scmp.lt.u32.totalorder %s1931_s12, %s1988_s8 }
 0x492   : > { %p1402_p2 = scmp.lt.u32.totalorder %s1400_s22, %s1396_s23  ;;  %p1404_p8 = scmp.lt.u32.totalorder %s1396_s23, %s1931_s12 }
 0x493   : > { %p1398_p10 = pnand %p1397_p4, %p2003_p9 }
 0x494   : > { %p1403_p5 = por %p1402_p2, %p1401_p1 }
 0x495   : > { %p1399_p12 = pneg %p1398_p10 }
 0x496   : > { %p1405_p11 = por %p1404_p8, %p1403_p5 }
 0x498   : > { %p1406_p0 = pnand %p1405_p11, %p1399_p12 }
 0x49a   : > { %1409 = shalt.err (!%p1406_p0)
}
 0x49b   : > { %1214 = dma.vmem_to_hbm [thread:$0]  (%p2003_p9), %s1933_s24, 128, %s1931_s12, %s1007_s14  }
 0x49c PF: > { %s1035_s15 = sand.u32 1, %s1444_s27   ;;  %p2004_p7 = scmp.ne.s32.totalorder %s1993_s20, 0 }
 0x49d   : > { %p2005_p13 = scmp.ge.s32.totalorder %s1464_s10, 2  ;;  %s1036_s30 = scalar_lea.sflag [#allocation7], %s1035_s15 }
 0x49f   : > { %p1221_p3 = pnand %p2005_p13, %p2004_p7 }
 0x4a1   : > { %1439 = dma.done.wait (!%p1221_p3), %s1036_s30, 128  }
 0x4a2   : > { %1441 = vsyncadd (!%p1221_p3), %s1036_s30, 4294967168  ;;  %s24_s10 = sadd.s32 1, %s1464_s10   ;;  %s2006_s27 = smov %s1448_s28 }
 0x4a3   : > { %p21_p6 = scmp.ge.s32.totalorder %s24_s10, 4   ;;  %s2007_s28 = smov %s1452_s29 }
 0x4a4   : > { %s2008_s29 = smov %s1579_s19  ;;  %s2009_s30 = smov %s1460_s9 }
 0x4a5   : > { %s2010_s9 = smov %s2012_s13  ;;  %23 = sbr.rel (!%p21_p6) target bundleno = 6 (0x6), region = 102 }
 0x4ac   :  { %1041 = vsyncpa [#allocation6], 1 }
 0x4ad   :  { %1043 = vsyncpa [#allocation6 + $0x1], 1 }
 0x4ae   :  { %1044 = vsyncpa [#allocation7], 1 }
 0x4af   :  { %1046 = vsyncpa [#allocation7 + $0x1], 1 }

</bundles_post_ra>
